<compile_context>
chip_gen: v7x
topology: tpu7x:2x2x1
jax: 0.10.0
libtpu: 0.0.40
codegen_flags: <defaults>
</compile_context>

<pallas_src>
import functools

import jax
import jax.numpy as jnp
from jax.experimental import pallas as pl
from jax.experimental.pallas import tpu as pltpu


# ----------------------------- Pallas kernel -------------------------------
def fm_kernel(bias_ref, xc_ref, mask_ref, blk_ref, ui1_ref, ui2_ref, w_ref,
              out_ref, *, num_feats, hidden):
    # bias_ref: (1, 1)   f32 in SMEM  -- scalar bias
    # xc_ref  : (D, tB)  int32        -- feature value replicated onto each of its bit-columns
    # mask_ref: (D, 1)   int32        -- per-column bit mask (MSB-first within each feature)
    # blk_ref : (D, D)   f32          -- block-diagonal ones (same-feature indicator)
    # ui1_ref : (2, tB)  f32          -- first-order user/item embeddings
    # ui2_ref : (2H, tB) f32          -- second-order user/item embeddings (user rows, then item rows)
    # w_ref   : (F*H+1, D) f32        -- fused block-diagonal weights; last row = first-order weights
    # out_ref : (1, tB)  f32          -- lane-dense output row
    xc = xc_ref[...]
    # in-kernel multi-hot bit expansion (VPU, hides under the matmul)
    hot = (jnp.bitwise_and(xc, mask_ref[...]) != 0).astype(jnp.float32)     # (D, tB)
    # per-feature popcount broadcast back onto that feature's rows (tiny MXU matmul)
    denom = jnp.dot(blk_ref[...], hot, preferred_element_type=jnp.float32)  # (D, tB)
    # NOTE: a feature value of 0 (no bits set) yields 0/0 = NaN, matching the
    # PyTorch module's binary() semantics exactly.
    bins = hot / denom                                                      # (D, tB)

    # one fused MXU matmul: all second-order projections + first-order term
    proj = jnp.dot(w_ref[...], bins, preferred_element_type=jnp.float32)    # (F*H+1, tB)

    # first order: user + item + (fused) feature linear term
    first = (jnp.sum(ui1_ref[...], axis=0, keepdims=True)
             + proj[num_feats * hidden:num_feats * hidden + 1, :])          # (1, tB)

    # second order: 0.5 * sum_h( (sum_fields e)^2 - sum_fields e^2 )
    ui2 = ui2_ref[...]
    u2 = ui2[0:hidden, :]
    i2 = ui2[hidden:2 * hidden, :]
    sum_e = u2 + i2
    sum_e2 = u2 * u2 + i2 * i2
    for f in range(num_feats):                                              # static, tiny F
        ef = proj[f * hidden:(f + 1) * hidden, :]                           # (H, tB)
        sum_e = sum_e + ef
        sum_e2 = sum_e2 + ef * ef
    second = 0.5 * jnp.sum(sum_e * sum_e - sum_e2, axis=0, keepdims=True)   # (1, tB)

    out_ref[...] = bias_ref[0, 0] + first + second


# ------------------------------ JAX glue ------------------------------------
def binary_encode(vals, bits):
    """Multi-hot bit encoding (MSB first), normalized by the number of set bits."""
    mask = (2 ** jnp.arange(bits - 1, -1, -1)).astype(vals.dtype)           # [bits]
    out = (jnp.bitwise_and(vals[:, None], mask[None, :]) != 0).astype(jnp.float32)
    return out / jnp.sum(out, axis=1, keepdims=True)


def fm_forward(x, params, feat_dim, tile_b=256):
    B = x.shape[0]
    H = params["second_user"].shape[1]
    F = len(feat_dim)
    D = int(sum(feat_dim))          # total bit-columns across all features
    N = F * H + 1                   # fused matmul output rows (+1 = first-order)

    # pad batch up to a multiple of tile_b (lane-dense tiles, grid >= 1)
    B_pad = ((B + tile_b - 1) // tile_b) * tile_b
    pad = B_pad - B

    # --- batch-sized glue (embedding gathers only), batch-on-lane layout ---
    u1 = params["first_user"][x[:, 0], 0]                                   # [B]
    i1 = params["first_item"][x[:, 1], 0]                                   # [B]
    ui1 = jnp.stack([u1, i1], axis=0)                                       # [2, B]
    u2 = params["second_user"][x[:, 0]].T                                   # [H, B]
    i2 = params["second_item"][x[:, 1]].T                                   # [H, B]
    ui2 = jnp.concatenate([u2, i2], axis=0)                                 # [2H, B]

    feat_of_row = jnp.concatenate(
        [jnp.full((bits,), f, jnp.int32) for f, bits in enumerate(feat_dim)])  # [D]
    xc = x[:, 2:].T.astype(jnp.int32)[feat_of_row, :]                       # [D, B]

    if pad:
        ui1 = jnp.pad(ui1, ((0, 0), (0, pad)))
        ui2 = jnp.pad(ui2, ((0, 0), (0, pad)))
        # pad feature values with 1 so padded lanes don't produce 0/0 NaNs
        xc = jnp.pad(xc, ((0, 0), (0, pad)), constant_values=1)

    # --- small batch-independent constants ---
    mask_col = jnp.concatenate(
        [2 ** jnp.arange(bits - 1, -1, -1, dtype=jnp.int32) for bits in feat_dim]
    )[:, None]                                                              # [D, 1]
    sameblk = (feat_of_row[:, None] == feat_of_row[None, :]).astype(jnp.float32)  # [D, D]

    # fused block-diagonal weight: rows f*H:(f+1)*H hold W2_f, last row holds w1_f
    w_big = jnp.zeros((N, D), jnp.float32)
    off = 0
    for f, bits in enumerate(feat_dim):
        w_big = w_big.at[f * H:(f + 1) * H, off:off + bits].set(params["second_feat"][f])
        w_big = w_big.at[F * H, off:off + bits].set(params["first_feat"][f])
        off += bits

    bias = params["bias"].reshape(1, 1).astype(jnp.float32)                 # [1, 1]

    kernel = functools.partial(fm_kernel, num_feats=F, hidden=H)
    out = pl.pallas_call(
        kernel,
        out_shape=jax.ShapeDtypeStruct((1, B_pad), jnp.float32),
        grid_spec=pl.GridSpec(
            grid=(B_pad // tile_b,),
            in_specs=[
                pl.BlockSpec((1, 1), lambda b: (0, 0),
                             memory_space=pltpu.MemorySpace.SMEM),          # bias (scalar)
                pl.BlockSpec((D, tile_b), lambda b: (0, b)),                # xc
                pl.BlockSpec((D, 1), lambda b: (0, 0)),                     # bit masks
                pl.BlockSpec((D, D), lambda b: (0, 0)),                     # same-feature blocks
                pl.BlockSpec((2, tile_b), lambda b: (0, b)),                # first-order u/i
                pl.BlockSpec((2 * H, tile_b), lambda b: (0, b)),            # second-order u/i
                pl.BlockSpec((N, D), lambda b: (0, 0)),                     # fused weights
            ],
            out_specs=pl.BlockSpec((1, tile_b), lambda b: (0, b)),          # lane-dense output
        ),
        compiler_params=pltpu.CompilerParams(
            dimension_semantics=("parallel",)),
    )(bias, xc, mask_col, sameblk, ui1, ui2, w_big)
    return out[0, :B]


# --------------------------- pure-JAX reference -----------------------------
def fm_reference(x, params, feat_dim):
    u1 = params["first_user"][x[:, 0]]
    i1 = params["first_item"][x[:, 1]]
    feats = [binary_encode(x[:, i + 2], d) for i, d in enumerate(feat_dim)]
    feat_x = jnp.concatenate(
        [f @ params["first_feat"][i][:, None] for i, f in enumerate(feats)], axis=1
    )
    first_x = jnp.sum(jnp.concatenate([u1, i1, feat_x], axis=1), axis=1, keepdims=True)
    out = params["bias"] + first_x

    u2 = params["second_user"][x[:, 0]][:, None, :]
    i2 = params["second_item"][x[:, 1]][:, None, :]
    feat2 = jnp.stack(
        [f @ params["second_feat"][i].T for i, f in enumerate(feats)], axis=1
    )
    emb = jnp.concatenate([u2, i2, feat2], axis=1)
    sos = jnp.sum(emb, axis=1) ** 2
    ssq = jnp.sum(emb ** 2, axis=1)
    second = 0.5 * jnp.sum(sos - ssq, axis=1, keepdims=True)
    return (out + second)[:, 0]


# ---------------------------- param construction ----------------------------
def xavier_uniform(key, shape):
    fan_out, fan_in = shape
    bound = (6.0 / (fan_in + fan_out)) ** 0.5
    return jax.random.uniform(key, shape, jnp.float32, -bound, bound)


def init_params(key, n_users, n_items, feat_dim, hidden_dim):
    keys = jax.random.split(key, 4 + 2 * len(feat_dim))
    params = {
        "bias": jnp.zeros((1,), jnp.float32),
        "first_user": xavier_uniform(keys[0], (n_users, 1)),
        "first_item": xavier_uniform(keys[1], (n_items, 1)),
        "second_user": xavier_uniform(keys[2], (n_users, hidden_dim)),
        "second_item": xavier_uniform(keys[3], (n_items, hidden_dim)),
        # Linear(feat_dim[i], 1, bias=False): keep only the weight row [feat_dim[i]]
        "first_feat": [
            xavier_uniform(keys[4 + i], (1, feat_dim[i]))[0]
            for i in range(len(feat_dim))
        ],
        # Linear(feat_dim[i], hidden_dim, bias=False): weight [H, feat_dim[i]]
        "second_feat": [
            xavier_uniform(keys[4 + len(feat_dim) + i], (hidden_dim, feat_dim[i]))
            for i in range(len(feat_dim))
        ],
    }
    return params


if __name__ == "__main__":
    n_users, n_items = 50, 40
    hidden_dim = 32
    feat_dim = (5, 7, 3)
    batch = 512          # tile_b=256 -> grid of 2 (even: both TCs busy on v7x)
    tile_b = 256

    key = jax.random.PRNGKey(0)
    pkey, xkey = jax.random.split(key)
    params = init_params(pkey, n_users, n_items, feat_dim, hidden_dim)

    # input x: [B, 2 + F] int32; feature cols must be >= 1 (at least one bit set)
    ks = jax.random.split(xkey, 2 + len(feat_dim))
    cols = [
        jax.random.randint(ks[0], (batch,), 0, n_users, jnp.int32),
        jax.random.randint(ks[1], (batch,), 0, n_items, jnp.int32),
    ]
    for i, bits in enumerate(feat_dim):
        cols.append(jax.random.randint(ks[2 + i], (batch,), 1, 2 ** bits, jnp.int32))
    x = jnp.stack(cols, axis=1)                               # [B, 2+F]

    out = fm_forward(x, params, feat_dim, tile_b=tile_b)
    out = jax.block_until_ready(out)

    ref = fm_reference(x, params, feat_dim)
    assert out.shape == (batch,)
    assert jnp.allclose(out, ref, rtol=1e-5, atol=1e-5), (out, ref)
    print("KERNEL_OK")
</pallas_src>

<mosaic_0001>
module attributes {stable_mosaic.version = 11 : i64} {
  func.func @fm_kernel(%arg0: i32, %arg1: memref<1x1xf32, #tpu.memory_space<smem>>, %arg2: memref<15x256xi32, #tpu.memory_space<vmem>>, %arg3: memref<15x1xi32, #tpu.memory_space<vmem>>, %arg4: memref<15x15xf32, #tpu.memory_space<vmem>>, %arg5: memref<2x256xf32, #tpu.memory_space<vmem>>, %arg6: memref<64x256xf32, #tpu.memory_space<vmem>>, %arg7: memref<97x15xf32, #tpu.memory_space<vmem>>, %arg8: memref<1x256xf32, #tpu.memory_space<vmem>>) attributes {dimension_semantics = [#tpu.dimension_semantics<parallel>], iteration_bounds = array<i64: 2>, scalar_prefetch = 0 : i64, scratch_operands = 0 : i64, tpu.core_type = #tpu.core_type<tc>, window_params = [{transform_indices = @transform_0, window_bounds = array<i64: 1, 1>}, {transform_indices = @transform_1, window_bounds = array<i64: 15, 256>}, {pipeline_mode = #tpu.pipeline_mode<synchronous>, transform_indices = @transform_2, window_bounds = array<i64: 15, 1>}, {pipeline_mode = #tpu.pipeline_mode<synchronous>, transform_indices = @transform_3, window_bounds = array<i64: 15, 15>}, {transform_indices = @transform_4, window_bounds = array<i64: 2, 256>}, {transform_indices = @transform_5, window_bounds = array<i64: 64, 256>}, {pipeline_mode = #tpu.pipeline_mode<synchronous>, transform_indices = @transform_6, window_bounds = array<i64: 97, 15>}, {transform_indices = @transform_7, window_bounds = array<i64: 1, 256>}]} {
    %c0 = arith.constant 0 : index
    %c0_0 = arith.constant 0 : index
    %0 = vector.load %arg2[%c0, %c0_0] : memref<15x256xi32, #tpu.memory_space<vmem>>, vector<15x256xi32>
    %c0_1 = arith.constant 0 : index
    %c0_2 = arith.constant 0 : index
    %1 = vector.load %arg3[%c0_1, %c0_2] : memref<15x1xi32, #tpu.memory_space<vmem>>, vector<15x1xi32>
    %2 = vector.broadcast %1 : vector<15x1xi32> to vector<15x256xi32>
    %3 = arith.andi %0, %2 : vector<15x256xi32>
    %c0_i32 = arith.constant 0 : i32
    %4 = vector.broadcast %c0_i32 : i32 to vector<15x256xi32>
    %5 = arith.cmpi ne, %3, %4 : vector<15x256xi32>
    %6 = arith.extui %5 : vector<15x256xi1> to vector<15x256xi32>
    %7 = arith.sitofp %6 : vector<15x256xi32> to vector<15x256xf32>
    %c0_3 = arith.constant 0 : index
    %c0_4 = arith.constant 0 : index
    %8 = vector.load %arg4[%c0_3, %c0_4] : memref<15x15xf32, #tpu.memory_space<vmem>>, vector<15x15xf32>
    %cst = arith.constant dense<0.000000e+00> : vector<15x256xf32>
    %9 = tpu.matmul %8, %7, %cst {dimension_numbers = #tpu.dot_dimension_numbers<[1], [0], [0], [1], [0, 0, 1, 1], [], []>} : vector<15x15xf32>, vector<15x256xf32>, vector<15x256xf32> -> vector<15x256xf32>
    %10 = arith.divf %7, %9 : vector<15x256xf32>
    %c0_5 = arith.constant 0 : index
    %c0_6 = arith.constant 0 : index
    %11 = vector.load %arg7[%c0_5, %c0_6] : memref<97x15xf32, #tpu.memory_space<vmem>>, vector<97x15xf32>
    %cst_7 = arith.constant dense<0.000000e+00> : vector<97x256xf32>
    %12 = tpu.matmul %11, %10, %cst_7 {dimension_numbers = #tpu.dot_dimension_numbers<[1], [0], [0], [1], [0, 0, 1, 1], [], []>} : vector<97x15xf32>, vector<15x256xf32>, vector<97x256xf32> -> vector<97x256xf32>
    %c0_8 = arith.constant 0 : index
    %c0_9 = arith.constant 0 : index
    %13 = vector.load %arg5[%c0_8, %c0_9] : memref<2x256xf32, #tpu.memory_space<vmem>>, vector<2x256xf32>
    %cst_10 = arith.constant dense<0.000000e+00> : vector<256xf32>
    %14 = vector.multi_reduction <add>, %13, %cst_10 [0] : vector<2x256xf32> to vector<256xf32>
    %15 = vector.shape_cast %14 : vector<256xf32> to vector<1x256xf32>
    %16 = vector.extract_strided_slice %12 {offsets = [96, 0], sizes = [1, 256], strides = [1, 1]} : vector<97x256xf32> to vector<1x256xf32>
    %17 = arith.addf %15, %16 : vector<1x256xf32>
    %c0_11 = arith.constant 0 : index
    %c0_12 = arith.constant 0 : index
    %18 = vector.load %arg6[%c0_11, %c0_12] : memref<64x256xf32, #tpu.memory_space<vmem>>, vector<64x256xf32>
    %19 = vector.extract_strided_slice %18 {offsets = [0, 0], sizes = [32, 256], strides = [1, 1]} : vector<64x256xf32> to vector<32x256xf32>
    %20 = vector.extract_strided_slice %18 {offsets = [32, 0], sizes = [32, 256], strides = [1, 1]} : vector<64x256xf32> to vector<32x256xf32>
    %21 = arith.addf %19, %20 : vector<32x256xf32>
    %22 = arith.mulf %19, %19 : vector<32x256xf32>
    %23 = arith.mulf %20, %20 : vector<32x256xf32>
    %24 = arith.addf %22, %23 : vector<32x256xf32>
    %25 = vector.extract_strided_slice %12 {offsets = [0, 0], sizes = [32, 256], strides = [1, 1]} : vector<97x256xf32> to vector<32x256xf32>
    %26 = arith.addf %21, %25 : vector<32x256xf32>
    %27 = arith.mulf %25, %25 : vector<32x256xf32>
    %28 = arith.addf %24, %27 : vector<32x256xf32>
    %29 = vector.extract_strided_slice %12 {offsets = [32, 0], sizes = [32, 256], strides = [1, 1]} : vector<97x256xf32> to vector<32x256xf32>
    %30 = arith.addf %26, %29 : vector<32x256xf32>
    %31 = arith.mulf %29, %29 : vector<32x256xf32>
    %32 = arith.addf %28, %31 : vector<32x256xf32>
    %33 = vector.extract_strided_slice %12 {offsets = [64, 0], sizes = [32, 256], strides = [1, 1]} : vector<97x256xf32> to vector<32x256xf32>
    %34 = arith.addf %30, %33 : vector<32x256xf32>
    %35 = arith.mulf %33, %33 : vector<32x256xf32>
    %36 = arith.addf %32, %35 : vector<32x256xf32>
    %37 = arith.mulf %34, %34 : vector<32x256xf32>
    %38 = arith.subf %37, %36 : vector<32x256xf32>
    %cst_13 = arith.constant dense<0.000000e+00> : vector<256xf32>
    %39 = vector.multi_reduction <add>, %38, %cst_13 [0] : vector<32x256xf32> to vector<256xf32>
    %40 = vector.shape_cast %39 : vector<256xf32> to vector<1x256xf32>
    %cst_14 = arith.constant 5.000000e-01 : f32
    %41 = vector.broadcast %cst_14 : f32 to vector<1x256xf32>
    %42 = arith.mulf %41, %40 : vector<1x256xf32>
    %c0_15 = arith.constant 0 : index
    %c0_16 = arith.constant 0 : index
    %43 = memref.load %arg1[%c0_15, %c0_16] : memref<1x1xf32, #tpu.memory_space<smem>>
    %44 = vector.broadcast %43 : f32 to vector<1x256xf32>
    %45 = arith.addf %44, %17 : vector<1x256xf32>
    %46 = arith.addf %45, %42 : vector<1x256xf32>
    %c0_17 = arith.constant 0 : index
    %c0_18 = arith.constant 0 : index
    %47 = vector.load %arg8[%c0_17, %c0_18] : memref<1x256xf32, #tpu.memory_space<vmem>>, vector<1x256xf32>
    tpu.vector_store %arg8[%c0_17, %c0_18], %46 {strides = array<i32>} : memref<1x256xf32, #tpu.memory_space<vmem>>, vector<1x256xf32>,
    return
  }
  func.func @transform_0(%arg0: i32) -> (i32, i32) {
    %c0_i32 = arith.constant 0 : i32
    %c0_i32_0 = arith.constant 0 : i32
    %c0_i32_1 = arith.constant 0 : i32
    return %c0_i32, %c0_i32_0 : i32, i32
  }
  func.func @transform_1(%arg0: i32) -> (i32, i32) {
    %c0_i32 = arith.constant 0 : i32
    %c0_i32_0 = arith.constant 0 : i32
    return %c0_i32, %arg0 : i32, i32
  }
  func.func @transform_2(%arg0: i32) -> (i32, i32) {
    %c0_i32 = arith.constant 0 : i32
    %c0_i32_0 = arith.constant 0 : i32
    %c0_i32_1 = arith.constant 0 : i32
    return %c0_i32, %c0_i32_0 : i32, i32
  }
  func.func @transform_3(%arg0: i32) -> (i32, i32) {
    %c0_i32 = arith.constant 0 : i32
    %c0_i32_0 = arith.constant 0 : i32
    %c0_i32_1 = arith.constant 0 : i32
    return %c0_i32, %c0_i32_0 : i32, i32
  }
  func.func @transform_4(%arg0: i32) -> (i32, i32) {
    %c0_i32 = arith.constant 0 : i32
    %c0_i32_0 = arith.constant 0 : i32
    return %c0_i32, %arg0 : i32, i32
  }
  func.func @transform_5(%arg0: i32) -> (i32, i32) {
    %c0_i32 = arith.constant 0 : i32
    %c0_i32_0 = arith.constant 0 : i32
    return %c0_i32, %arg0 : i32, i32
  }
  func.func @transform_6(%arg0: i32) -> (i32, i32) {
    %c0_i32 = arith.constant 0 : i32
    %c0_i32_0 = arith.constant 0 : i32
    %c0_i32_1 = arith.constant 0 : i32
    return %c0_i32, %c0_i32_0 : i32, i32
  }
  func.func @transform_7(%arg0: i32) -> (i32, i32) {
    %c0_i32 = arith.constant 0 : i32
    %c0_i32_0 = arith.constant 0 : i32
    return %c0_i32, %arg0 : i32, i32
  }
}

</mosaic_0001>

<bundles_post_ra>
// kernel: tpu_custom_call.1
= control target key start
LH: loop header
LB: loop body
LE: loop exit
PB: predicated region body
PF: predicated region fallthrough
CT: control target
= control target key end

     0   :  { %s1607_s0 = inlined_call_operand.<no memory space> [shape: f32[1,1], index: 0, kind: input, shape index: {}]   ;;  %s1608_s1 = inlined_call_operand.vmem [shape: s32[15,512], index: 1, kind: input, shape index: {}]   ;;  %s1609_s2 = inlined_call_operand.vmem [shape: s32[15,1], index: 2, kind: input, shape index: {}]   ;;  %s1610_s3 = inlined_call_operand.vmem [shape: f32[15,15], index: 3, kind: input, shape index: {}]   ;;  %s1611_s4 = inlined_call_operand.vmem [shape: f32[2,512], index: 4, kind: input, shape index: {}]   ;;  %s1612_s5 = inlined_call_operand.hbm [shape: f32[64,512], index: 5, kind: input, shape index: {}]   ;;  %s1613_s6 = inlined_call_operand.vmem [shape: f32[97,15], index: 6, kind: input, shape index: {}]   ;;  %s1614_s7 = inlined_call_operand.hbm [shape: f32[1,512], index: 7, kind: output, shape index: {}]  }
   0x1   :  { %12 = sst [smem:[#allocation2]] %s1607_s0 }
   0x2   :  { %13 = vsyncpa [#allocation5], 0 }
   0x3   :  { %15 = vsyncpa [#allocation5 + $0x1], 0 }
   0x4   :  { %16 = vsyncpa [#allocation6], 0 }
   0x5   :  { %18 = vsyncpa [#allocation6 + $0x1], 0  ;;  %s1298_s26 = smov 0   ;;  %s1300_s27 = smov 0  }
   0x6   :  { %s1302_s28 = smov 0   ;;  %s1304_s29 = smov 0  }
   0x7 LB: > { %s1319_s0 = sadd.s32 4294967295, %s1243_s29   ;;  %s1028_s30 = sadd.s32 4294967294, %s1243_s29   ;;  %s1243_s29 = sphi %s1304_s29, %s1631_s29   ;;  %s1239_s28 = sphi %s1302_s28, %s1630_s28   ;;  %s1235_s27 = sphi %s1300_s27, %s1629_s27   ;;  %s1231_s26 = sphi %s1298_s26, %s1628_s26  }
   0x8   : > { %s1323_s8 = sadd.s32 1, %s1243_s29   ;;  %s52_s9 = sadd.s32 1, %s1239_s28 }
   0x9   : > { %s49_s10 = ssub.s32 %s1243_s29, %s1323_s8  ;;  %p59_p0 = scmp.ne.s32.totalorder %s1239_s28, %s1235_s27 }
   0xa   : > { %p50_p1 = scmp.eq.s32.totalorder %s49_s10, 0  ;;  %p60_p2 = scmp.eq.s32.totalorder %s1243_s29, 0 }
   0xb   : > { %p159_p3 = scmp.ne.s32.totalorder %s1235_s27, %s1231_s26  ;;  %p160_p4 = scmp.eq.s32.totalorder %s1319_s0, 0 }
   0xc   : > { %s1335_s11 = scalar_select %p50_p1, %s1239_s28, %s52_s9  }
   0xd   : > { %p1337_p5 = por %p60_p2, %p59_p0  ;;  %p1341_p6 = por %p160_p4, %p159_p3 }
   0xe   : > { %p204_p7 = scmp.eq.s32.totalorder %s1319_s0, 1  ;;  %p210_p8 = scmp.eq.s32.totalorder %s1028_s30, 1 }
   0xf   : > { %p1615_p11 = scmp.ge.s32.totalorder %s1243_s29, 2 }
  0x10   : > { %p1346_p9 = por %p204_p7, %p59_p0  ;;  %p1350_p10 = por %p210_p8, %p159_p3 }
  0x11   : > { %238 = sbr.rel (%p1615_p11) target bundleno = 58 (0x3a), region = 32 }
  0x12   : > { %s1619_s14 = scalar_select %p1346_p9, 1, 0 }
  0x13   : > { %s1620_s15 = scalar_select %p1350_p10, 1, 0 }
  0x18   : > { %241 = sbr.rel (!%p1337_p5) target bundleno = 31 (0x1f), region = 36  ;;  %s243_s16 = sand.u32 (%p1337_p5), 1, %s1239_s28  }
  0x19   : > { %s1074_s17 = sshll.u32 (%p1337_p5), %s1243_s29, 4  ;;  %s1031_s18 = sshll.u32 (%p1337_p5), %s243_s16, 5 }
  0x1a   : > { %s248_s21 = scalar_lea.vmem (%p1337_p5), %s1608_s1, %s1074_s17  ;;  %s245_s22 = scalar_lea.vmem (%p1337_p5), [#allocation3], %s1031_s18 }
  0x1b   : > { %v261_v0 = vld [vmem:[%s248_s21] sm:$0xff] (%p1337_p5)  ;;  %v263_v1 = vld [vmem:[%s248_s21 + $0x8] sm:$0xff] (%p1337_p5) }
  0x1c   : > { %v265_v2 = vld [vmem:[%s248_s21 + $0x20] sm:$0xff] (%p1337_p5)  ;;  %262 = vst [vmem:[%s245_s22] sm:$0xff] (%p1337_p5), %v261_v0  ;;  %264 = vst [vmem:[%s245_s22 + $0x8] sm:$0xff] (%p1337_p5), %v263_v1  ;;  %v267_v3 = vld [vmem:[%s248_s21 + $0x28] sm:$0xff] (%p1337_p5) }
  0x1d   : > { %266 = vst [vmem:[%s245_s22 + $0x10] sm:$0xff] (%p1337_p5), %v265_v2  ;;  %268 = vst [vmem:[%s245_s22 + $0x18] sm:$0xff] (%p1337_p5), %v267_v3 }
  0x1f PF: > { %s284_s23 = sand.u32 1, %s1239_s28   ;;  %s1075_s24 = sshll.u32 %s1243_s29, 8 }
  0x20   : > { %s1034_s25 = sshll.u32 %s284_s23, 7  ;;  %s1369_s10 = scalar_lea.hbm %s1612_s5, %s1075_s24 }
  0x21   : > { %s288_s16 = scalar_lea.vmem [#allocation4], %s1034_s25  ;;  %s1373_s18 = scalar_lea.sflag [#allocation5], %s284_s23 }
  0x22   : > { %s295_s17 = sshll.u32 %s288_s16, 4  ;;  %s1149_s19 = scalar_lea.hbm %s1369_s10, 2048  ;;  %s1371_s17 = int_to_ptr.vmem [resolvable:$true] %s295_s17 }
  0x23   : > { %p1150_p12 = scmp.ne.s32.totalorder %s1369_s10, %s1149_s19  ;;  %s1153_s22 = scalar_lea.hbm %s1612_s5, 4096 }
  0x24   : > { %p1154_p1 = scmp.lt.u32.totalorder %s1369_s10, %s1612_s5  ;;  %p1155_p2 = scmp.lt.u32.totalorder %s1153_s22, %s1149_s19 }
  0x25   : > { %p1151_p13 = pnand %p1150_p12, %p1337_p5  ;;  %p1157_p4 = scmp.lt.u32.totalorder %s1149_s19, %s1369_s10 }
  0x26   : > { %p1156_p3 = por %p1155_p2, %p1154_p1 }
  0x27   : > { %p1152_p0 = pneg %p1151_p13 }
  0x28   : > { %p1158_p7 = por %p1157_p4, %p1156_p3 }
  0x2a   : > { %p1159_p8 = pnand %p1158_p7, %p1152_p0 }
  0x2c   : > { %1162 = shalt.err (!%p1159_p8)
}
  0x2d   : > { %s1163_s23 = scalar_lea.vmem %s1371_s17, 2048  ;;  %s1245_s25 = smov [#allocation4]  }
  0x2e   : > { %p1164_p12 = scmp.ne.s32.totalorder %s1371_s17, %s1163_s23  ;;  %s1167_s9 = sshll.u32 %s1245_s25, 4  ;;  %s1168_s9 = int_to_ptr.vmem [resolvable:$false] %s1167_s9 }
  0x2f   : > { %s1169_s16 = scalar_lea.vmem %s1168_s9, 4096  ;;  %p1170_p10 = scmp.lt.s32.totalorder %s1371_s17, %s1168_s9 }
  0x30   : > { %p1165_p13 = pnand %p1164_p12, %p1337_p5  ;;  %p1171_p9 = scmp.lt.s32.totalorder %s1169_s16, %s1163_s23 }
  0x32   : > { %p1166_p11 = pneg %p1165_p13  ;;  %p1172_p1 = por %p1171_p9, %p1170_p10 }
  0x34   : > { %p1173_p2 = pnand %p1172_p1, %p1166_p11 }
  0x36   : > { %1176 = shalt.err (!%p1173_p2)
}
  0x37   : > { %s1246_s19 = smov 512   ;;  %s1247_s20 = smov 256  }
  0x38   : > { %s1248_s21 = smov 16  }
  0x39   : > { %1091 = dma.hbm_to_vmem [thread:$0]  (%p1337_p5), %s1369_s10, 2048, %s1371_s17, %s1373_s18, %s1246_s19, %s1247_s20, %s1248_s21  }
  0x3a PF: > { %p1037_p0 = scmp.ge.s32.totalorder %s1243_s29, 1  ;;  %p303_p3 = scmp.lt.s32.totalorder %s1243_s29, 3 }
  0x3c   : > { %p304_p4 = pnand %p1037_p0, %p303_p3 }
  0x3d   : > { %s1400_s22 = sand.u32 (!%p304_p4), 1, %s1235_s27  }
  0x3e   : > { %307 = sbr.rel (%p304_p4) target bundleno = 730 (0x2da), region = 67  ;;  %s1038_s24 = sshll.u32 (!%p304_p4), %s1400_s22, 5 }
  0x3f   : > { %s1039_s30 = sshll.u32 (!%p304_p4), %s1400_s22, 7  ;;  %s312_s23 = scalar_lea.vmem (!%p304_p4), [#allocation3], %s1038_s24 }
  0x40   : > { %s317_s25 = scalar_lea.sflag (!%p304_p4), [#allocation5], %s1400_s22  ;;  %s1405_s12 = scalar_lea.vmem (!%p304_p4), [#allocation4], %s1039_s30 }
  0x45   : > { %1222 = dma.done.wait (%p1341_p6), %s317_s25, 2048  }
  0x46   : > { %1224 = vsyncadd (%p1341_p6), %s317_s25, 4294965248  ;;  %v1249_v4 = vmov 0   ;;  %v1250_v5 = vmov 0.0   ;;  %v374_v6 = vld [vmem:[%s1609_s2 + $0x8] sm:$0x7f]  ;;  %v373_v7 = vld [vmem:[%s1609_s2] sm:$0xff] }
  0x47   : > { %1140 = vset.pattern.permute.xlu0 %v1249_v4  ;;  %477 = vmatprep.mubr.f32.mxu0 %v1250_v5  ;;  %v371_v8 = vld [vmem:[%s312_s23 + $0x10] sm:$0x7f]  ;;  %v372_v9 = vld [vmem:[%s312_s23 + $0x18] sm:$0x7f]  ;;  %v369_v13 = vld [vmem:[%s312_s23] sm:$0xff]  ;;  %vm406_vm2 = vcmask 1046528  }
  0x48   : > { %650 = vmatprep.mubr.f32.mxu1 %v1250_v5  ;;  %379 = vperm.xlu0 %1140, %v374_v6   ;;  %v370_v14 = vld [vmem:[%s312_s23 + $0x8] sm:$0xff]  ;;  %v1251_v22 = vmov 1.0   ;;  %v397_v25 = vld [vmem:[%s1610_s3] sm:$0xff]  ;;  %vm399_vm7 = vcmask 121856   ;;  %vm1252_vm8 = vmmov 1   ;;  %v504_v46 = vld [vmem:[%s1613_s6 + $0x30] sm:$0xff] }
  0x49   : > { %v398_v26 = vld [vmem:[%s1610_s3 + $0x8] sm:$0x7f]  ;;  %vm1084_vm9 = vmpackc.low %vm406_vm2, %vm1252_vm8  ;;  %v498_v43 = vld [vmem:[%s1613_s6] sm:$0xff]  ;;  %s1041_s21 = sshll.u32 %s1319_s0, 1  ;;  %vm711_vm10 = vcmask 1041408   ;;  %s1040_s10 = sshll.u32 %s1400_s22, 1 }
  0x4a   : > { %v503_v44 = vld [vmem:[%s1613_s6 + $0x28] sm:$0xff]  ;;  %v500_v47 = vld [vmem:[%s1613_s6 + $0x10] sm:$0xff]  ;;  %v505_v48 = vld [vmem:[%s1613_s6 + $0x38] sm:$0xff]  ;;  %p362_p5 = scmp.lt.s32.totalorder %s1041_s21, 3  ;;  %s1076_s17 = sshll.u32 %s1319_s0, 5 }
  0x4b   : > { %v499_v45 = vld [vmem:[%s1613_s6 + $0x8] sm:$0xff]  ;;  %v501_v49 = vld [vmem:[%s1613_s6 + $0x18] sm:$0xff]  ;;  %v506_v50 = vld [vmem:[%s1613_s6 + $0x40] sm:$0xff]  ;;  %s359_s18 = scalar_lea.vmem [#allocation7], %s1040_s10  ;;  %s1563_s19 = scalar_lea.hbm %s1614_s7, %s1076_s17 }
  0x4c   : > { %376 = vperm.xlu0 %1140, %v373_v7   ;;  %v502_v51 = vld [vmem:[%s1613_s6 + $0x20] sm:$0xff]  ;;  %v507_v52 = vld [vmem:[%s1613_s6 + $0x48] sm:$0xff]  ;;  %v508_v53 = vld [vmem:[%s1613_s6 + $0x50] sm:$0xff]  ;;  %s1633_s21 = smov (!%p362_p5, %s1041_s21), 3  ;;  %s928_s9 = sshll.u32 %s359_s18, 4  ;;  %s1565_s9 = int_to_ptr.vmem [resolvable:$true] %s928_s9 }
  0x4d   : > { %v509_v54 = vld [vmem:[%s1613_s6 + $0x58] sm:$0xff]  ;;  %v510_v55 = vld [vmem:[%s1613_s6 + $0x60] sm:$0x1]  ;;  %s1042_s24 = sshll.u32 %s1633_s21, 1  ;;  %v729_v60 = vld [vmem:[%s1405_s12 + $0x8] sm:$0xff]  ;;  %s914_s20 = scalar_lea.sflag [#allocation6], %s1400_s22 }
  0x4e   : > { %s365_s25 = scalar_lea.vmem %s1611_s4, %s1042_s24  ;;  %v728_v57 = vld [vmem:[%s1405_s12] sm:$0xff]  ;;  %v737_v61 = vld [vmem:[%s1405_s12 + $0x48] sm:$0xff]  ;;  %v730_v62 = vld [vmem:[%s1405_s12 + $0x10] sm:$0xff]  ;;  %v753_v6 = vmul.f32 %v729_v60, %v729_v60  ;;  %s1177_s21 = scalar_lea.vmem %s1565_s9, 32 }
  0x4f   : > { %v1068_v56 = vld.sshfl [vmem:[%s365_s25] sm:$0x33 pattern:$0x76325410]  ;;  %v738_v63 = vld [vmem:[%s1405_s12 + $0x50] sm:$0xff]  ;;  %v752_v0 = vmul.f32 %v728_v57, %v728_v57  ;;  %v731_v1 = vld [vmem:[%s1405_s12 + $0x18] sm:$0xff]  ;;  %v761_v7 = vmul.f32 %v737_v61, %v737_v61  ;;  %p1178_p6 = scmp.ne.s32.totalorder %s1565_s9, %s1177_s21 }
  0x50   : > { %v708_v58 = vcombine.high %v1068_v56, %v1068_v56  ;;  %v736_v59 = vld [vmem:[%s1405_s12 + $0x40] sm:$0xff]  ;;  %v739_v2 = vld [vmem:[%s1405_s12 + $0x58] sm:$0xff]  ;;  %v712_v4 = vsel %vm711_vm10, %v1068_v56, 0.0  ;;  %v742_v20 = vld [vmem:[%s1405_s12 + $0x70] sm:$0xff]  ;;  %p1625_p9 = scmp.ne.s32.totalorder %s1619_s14, 0  ;;  %s1254_s0 = smov [#allocation7]  }
  0x51   : > { %v732_v3 = vld [vmem:[%s1405_s12 + $0x20] sm:$0xff]  ;;  %v735_v21 = vld [vmem:[%s1405_s12 + $0x38] sm:$0xff]  ;;  %s1181_s24 = sshll.u32 %s1254_s0, 4  ;;  %s1182_s24 = int_to_ptr.vmem [resolvable:$false] %s1181_s24 }
  0x52   : > { %p1179_p10 = pnand %p1178_p6, %p1625_p9  ;;  %s1183_s30 = scalar_lea.vmem %s1182_s24, 64 }
  0x53   : > { %p1184_p7 = scmp.lt.s32.totalorder %s1565_s9, %s1182_s24  ;;  %p1185_p8 = scmp.lt.s32.totalorder %s1183_s30, %s1177_s21 }
  0x54   : > { %p1180_p11 = pneg %p1179_p10 }
  0x55   : > { %p1186_p12 = por %p1185_p8, %p1184_p7 }
  0x57   : > { %p1187_p13 = pnand %p1186_p12, %p1180_p11 }
  0xc7   : > { %v380_v10 = vpop.permute.xlu0 %379 }
  0xc8   : > { %v383_v11 = vand.u32 %v380_v10, %v371_v8  ;;  %v384_v12 = vand.u32 %v380_v10, %v372_v9  ;;  %v740_v8 = vld [vmem:[%s1405_s12 + $0x60] sm:$0xff]  ;;  %v733_v9 = vld [vmem:[%s1405_s12 + $0x28] sm:$0xff] }
  0xc9   : > { %v741_v10 = vld [vmem:[%s1405_s12 + $0x68] sm:$0xff] }
  0xca   : > { %vm387_vm0 = vcmp.ne.s32.totalorder %v383_v11, 0  ;;  %vm388_vm1 = vcmp.ne.s32.totalorder %v384_v12, 0  ;;  %v719_v11 = vsel %vm711_vm10, %v708_v58, 0.0  ;;  %v1533_v12 = vadd.f32 %v736_v59, %v728_v57 }
  0xcb   : > { %v377_v15 = vpop.permute.xlu0 %376  ;;  %v1046_v16 = vsel %vm388_vm1, 1.0, %v1250_v5  ;;  %v1045_v17 = vsel %vm387_vm0, 1.0, %v1250_v5 }
  0xcc   : > { %v381_v18 = vand.u32 %v377_v15, %v369_v13  ;;  %v382_v19 = vand.u32 %v377_v15, %v370_v14  ;;  %v1077_v23 = vpack.c.bf16 %v1046_v16, %v1251_v22  ;;  %v1080_v24 = vpack.c.bf16 %v1045_v17, %v1251_v22  ;;  %v743_v22 = vld [vmem:[%s1405_s12 + $0x78] sm:$0xff] }
  0xcd   : > { %v1535_v13 = vadd.f32 %v737_v61, %v729_v60  ;;  %v754_v14 = vmul.f32 %v730_v62, %v730_v62  ;;  %v762_v15 = vmul.f32 %v738_v63, %v738_v63 }
  0xce   : > { %vm1421_vm3 = vcmp.ne.s32.totalorder %v381_v18, 0  ;;  %vm1425_vm4 = vcmp.ne.s32.totalorder %v382_v19, 0  ;;  %v763_v18 = vmul.f32 %v739_v2, %v739_v2  ;;  %v756_v19 = vmul.f32 %v732_v3, %v732_v3 }
  0xcf   : > { %vm1078_vm5 = vmpackc.low %vm406_vm2, %vm1425_vm4  ;;  %v1043_v32 = vsel %vm1421_vm3, 1.0, %v1250_v5  ;;  %v1044_v34 = vsel %vm1425_vm4, 1.0, %v1250_v5 }
  0xd0   : > { %1079 = vmatprep.subr.msk.bf16.mxu0 %vm1078_vm5, %v1077_v23  ;;  %vm1081_vm6 = vmpackc.low %vm406_vm2, %vm1421_vm3  ;;  %v713_v23 = vrot.slane %v712_v4, 4 }
  0xd1   : > { %1082 = vmatpush1.bf16.msk.msra.mxu0 %vm1081_vm6, %v1080_v24 }
  0xd4   : > { %1051 = vmatmul.mubr.msk.f32.vlgmr.msra.gmra.mrb[0].mxu0 %vm399_vm7, %v397_v25 }
  0xd5   : > { %483 = vmatprep.mubr.f32.mxu0 %v1250_v5 }
  0xd8   : > { %1052 = vmatmul.mubr.msk.f32.gmra.mrb[2].mxu0 %vm399_vm7, %v398_v26  ;;  %v764_v26 = vmul.f32 %v740_v8, %v740_v8 }
  0xd9   : > { %620 = vmatprep.mubr.f32.mxu0 %v1250_v5 }
 0x1a7   : > { %v479_v27 = vpop.f32.mrb[0].mxu0 }
 0x1a8   : > { %1141 = vrcp.f32 %v479_v27  ;;  %v481_v28 = vpop.f32.mrb[1].mxu0  ;;  %v757_v27 = vmul.f32 %v733_v9, %v733_v9 }
 0x1a9   : > { %1143 = vrcp.f32 %v481_v28  ;;  %v765_v28 = vmul.f32 %v741_v10, %v741_v10 }
 0x1ab   : > { %v485_v29 = vpop.f32.mrb[2].mxu0 }
 0x1ac   : > { %1145 = vrcp.f32 %v485_v29  ;;  %v487_v30 = vpop.f32.mrb[3].mxu0  ;;  %v720_v29 = vrot.slane %v719_v11, 4 }
 0x1ad   : > { %1147 = vrcp.f32 %v487_v30 }
 0x1b2   : > { %v1142_v31 = vpop.eup %1141 }
 0x1b3   : > { %v1144_v33 = vpop.eup %1143  ;;  %v491_v35 = vmul.f32 %v1142_v31, %v1043_v32  ;;  %v1541_v32 = vadd.f32 %v761_v7, %v753_v6 }
 0x1b4   : > { %v493_v36 = vmul.f32 %v1144_v33, %v1044_v34  ;;  %v746_v34 = vadd.f32 %v738_v63, %v730_v62 }
 0x1b6   : > { %v1146_v37 = vpop.eup %1145 }
 0x1b7   : > { %v1148_v38 = vpop.eup %1147  ;;  %v495_v39 = vmul.f32 %v1146_v37, %v1045_v17  ;;  %v755_v17 = vmul.f32 %v731_v1, %v731_v1  ;;  %v766_v37 = vmul.f32 %v742_v20, %v742_v20 }
 0x1b8   : > { %v497_v40 = vmul.f32 %v1148_v38, %v1046_v16  ;;  %v734_v16 = vld [vmem:[%s1405_s12 + $0x30] sm:$0xff]  ;;  %v759_v38 = vmul.f32 %v735_v21, %v735_v21  ;;  %s884_s12 = sld [smem:[#allocation2]] }
 0x1b9   : > { %v1086_v41 = vpack.c.bf16 %v495_v39, %v491_v35  ;;  %v747_v35 = vadd.f32 %v739_v2, %v731_v1  ;;  %v767_v39 = vmul.f32 %v743_v22, %v743_v22 }
 0x1ba   : > { %v1083_v42 = vpack.c.bf16 %v497_v40, %v493_v36  ;;  %v758_v36 = vmul.f32 %v734_v16, %v734_v16  ;;  %v770_v40 = vadd.f32 %v762_v15, %v754_v14 }
 0x1bc   : > { %1085 = vmatprep.subr.msk.bf16.mxu0 %vm1084_vm9, %v1083_v42  ;;  %1089 = vmatprep.subr.msk.bf16.mxu1 %vm1084_vm9, %v1083_v42  ;;  %v748_v42 = vadd.f32 %v740_v8, %v732_v3  ;;  %v774_v58 = vadd.f32 %v766_v37, %v758_v36 }
 0x1bd   : > { %1088 = vmatpush1.bf16.msk.msra.mxu0 %vm1084_vm9, %v1086_v41  ;;  %1090 = vmatpush1.bf16.msk.msra.mxu1 %vm1084_vm9, %v1086_v41  ;;  %v771_v41 = vadd.f32 %v763_v18, %v755_v17 }
 0x1c0   : > { %1055 = vmatmul.mubr.msk.f32.vlgmr.msra.gmra.mrb[4].mxu0 %vm399_vm7, %v498_v43  ;;  %1060 = vmatmul.mubr.msk.f32.vlgmr.msra.gmra.mrb[0].mxu1 %vm399_vm7, %v503_v44  ;;  %v1543_v43 = vadd.f32 %v713_v23, %v712_v4 }
 0x1c1   : > { %626 = vmatprep.mubr.f32.mxu0 %v1250_v5  ;;  %656 = vmatprep.mubr.f32.mxu1 %v1250_v5 }
 0x1c2   : > { %v715_v63 = vrot.slane %v1543_v43, 2 }
 0x1c4   : > { %1056 = vmatmul.mubr.msk.f32.gmra.mrb[6].mxu0 %vm399_vm7, %v499_v45  ;;  %1061 = vmatmul.mubr.msk.f32.gmra.mrb[2].mxu1 %vm399_vm7, %v504_v46  ;;  %v772_v46 = vadd.f32 %v764_v26, %v756_v19 }
 0x1c5   : > { %632 = vmatprep.mubr.f32.mxu0 %v1250_v5  ;;  %662 = vmatprep.mubr.f32.mxu1 %v1250_v5 }
 0x1c8   : > { %1057 = vmatmul.mubr.msk.f32.gmra.mrb[8].mxu0 %vm399_vm7, %v500_v47  ;;  %1062 = vmatmul.mubr.msk.f32.gmra.mrb[4].mxu1 %vm399_vm7, %v505_v48  ;;  %v749_v47 = vadd.f32 %v741_v10, %v733_v9  ;;  %v773_v48 = vadd.f32 %v765_v28, %v757_v27 }
 0x1c9   : > { %638 = vmatprep.mubr.f32.mxu0 %v1250_v5  ;;  %668 = vmatprep.mubr.f32.mxu1 %v1250_v5 }
 0x1cc   : > { %1058 = vmatmul.mubr.msk.f32.gmra.mrb[10].mxu0 %vm399_vm7, %v501_v49  ;;  %1063 = vmatmul.mubr.msk.f32.gmra.mrb[6].mxu1 %vm399_vm7, %v506_v50  ;;  %v1545_v49 = vadd.f32 %v720_v29, %v719_v11 }
 0x1cd   : > { %644 = vmatprep.mubr.f32.mxu0 %v1250_v5  ;;  %674 = vmatprep.mubr.f32.mxu1 %v1250_v5 }
 0x1d0   : > { %1059 = vmatmul.mubr.msk.f32.gmra.mrb[12].mxu0 %vm399_vm7, %v502_v51  ;;  %1064 = vmatmul.mubr.msk.f32.gmra.mrb[8].mxu1 %vm399_vm7, %v507_v52 }
 0x1d1   : > { %680 = vmatprep.mubr.f32.mxu1 %v1250_v5 }
 0x1d4   : > { %1065 = vmatmul.mubr.msk.f32.gmra.mrb[10].mxu1 %vm399_vm7, %v508_v53 }
 0x1d5   : > { %686 = vmatprep.mubr.f32.mxu1 %v1250_v5 }
 0x1d8   : > { %1066 = vmatmul.mubr.msk.f32.gmra.mrb[12].mxu1 %vm399_vm7, %v509_v54  ;;  %v750_v54 = vadd.f32 %v742_v20, %v734_v16 }
 0x1d9   : > { %692 = vmatprep.mubr.f32.mxu1 %v1250_v5  ;;  %v760_v5 = vmul.f32 %v736_v59, %v736_v59  ;;  %v775_v59 = vadd.f32 %v767_v39, %v759_v38 }
 0x1db   : > { %v768_v30 = vadd.f32 %v760_v5, %v752_v0  ;;  %v722_v5 = vrot.slane %v1545_v49, 2 }
 0x1dc   : > { %1067 = vmatmul.mubr.msk.f32.gmra.mrb[14].mxu1 %vm399_vm7, %v510_v55  ;;  %v751_v55 = vadd.f32 %v743_v22, %v735_v21 }
 0x293   : > { %v622_v24 = vpop.f32.mrb[4].mxu0  ;;  %v652_v25 = vpop.f32.mrb[0].mxu1 }
 0x294   : > { %v624_v31 = vpop.f32.mrb[5].mxu0  ;;  %v654_v33 = vpop.f32.mrb[1].mxu1  ;;  %v810_v60 = vmul.f32 %v652_v25, %v652_v25  ;;  %v784_v6 = vmul.f32 %v622_v24, %v622_v24  ;;  %v776_v18 = vadd.f32 %v1533_v12, %v622_v24 }
 0x295   : > { %v811_v0 = vmul.f32 %v654_v33, %v654_v33  ;;  %v785_v14 = vmul.f32 %v624_v31, %v624_v31  ;;  %v777_v22 = vadd.f32 %v1535_v13, %v624_v31 }
 0x296   : > { %v792_v29 = vadd.f32 %v784_v6, %v768_v30 }
 0x297   : > { %v628_v44 = vpop.f32.mrb[6].mxu0  ;;  %v658_v45 = vpop.f32.mrb[2].mxu1  ;;  %v793_v38 = vadd.f32 %v785_v14, %v1541_v32 }
 0x298   : > { %v778_v50 = vadd.f32 %v746_v34, %v628_v44  ;;  %v786_v51 = vmul.f32 %v628_v44, %v628_v44  ;;  %v630_v52 = vpop.f32.mrb[7].mxu0  ;;  %v660_v53 = vpop.f32.mrb[3].mxu1  ;;  %v812_v19 = vmul.f32 %v658_v45, %v658_v45 }
 0x299   : > { %v779_v56 = vadd.f32 %v747_v35, %v630_v52  ;;  %v787_v57 = vmul.f32 %v630_v52, %v630_v52  ;;  %v813_v23 = vmul.f32 %v660_v53, %v660_v53 }
 0x29a   : > { %v794_v61 = vadd.f32 %v786_v51, %v770_v40  ;;  %v802_v62 = vadd.f32 %v778_v50, %v652_v25 }
 0x29b   : > { %v795_v1 = vadd.f32 %v787_v57, %v771_v41  ;;  %v634_v2 = vpop.f32.mrb[8].mxu0  ;;  %v664_v3 = vpop.f32.mrb[4].mxu1  ;;  %v803_v4 = vadd.f32 %v779_v56, %v654_v33 }
 0x29c   : > { %v780_v7 = vadd.f32 %v748_v42, %v634_v2  ;;  %v788_v8 = vmul.f32 %v634_v2, %v634_v2  ;;  %v636_v9 = vpop.f32.mrb[9].mxu0  ;;  %v666_v10 = vpop.f32.mrb[5].mxu1  ;;  %v818_v11 = vadd.f32 %v810_v60, %v794_v61  ;;  %v814_v40 = vmul.f32 %v664_v3, %v664_v3 }
 0x29d   : > { %v781_v15 = vadd.f32 %v749_v47, %v636_v9  ;;  %v789_v16 = vmul.f32 %v636_v9, %v636_v9  ;;  %v819_v17 = vadd.f32 %v811_v0, %v795_v1  ;;  %v815_v41 = vmul.f32 %v666_v10, %v666_v10 }
 0x29e   : > { %v796_v20 = vadd.f32 %v788_v8, %v772_v46  ;;  %v804_v21 = vadd.f32 %v780_v7, %v658_v45 }
 0x29f   : > { %v797_v25 = vadd.f32 %v789_v16, %v773_v48  ;;  %v640_v26 = vpop.f32.mrb[10].mxu0  ;;  %v670_v27 = vpop.f32.mrb[6].mxu1  ;;  %v805_v28 = vadd.f32 %v781_v15, %v660_v53 }
 0x2a0   : > { %v782_v33 = vadd.f32 %v750_v54, %v640_v26  ;;  %v790_v34 = vmul.f32 %v640_v26, %v640_v26  ;;  %v642_v35 = vpop.f32.mrb[11].mxu0  ;;  %v672_v36 = vpop.f32.mrb[7].mxu1  ;;  %v820_v37 = vadd.f32 %v812_v19, %v796_v20  ;;  %v832_v42 = vmul.f32 %v670_v27, %v670_v27 }
 0x2a1   : > { %v783_v39 = vadd.f32 %v751_v55, %v642_v35  ;;  %v791_v12 = vmul.f32 %v642_v35, %v642_v35  ;;  %v821_v24 = vadd.f32 %v813_v23, %v797_v25  ;;  %v833_v45 = vmul.f32 %v672_v36, %v672_v36 }
 0x2a2   : > { %v806_v13 = vadd.f32 %v782_v33, %v664_v3  ;;  %v798_v31 = vadd.f32 %v790_v34, %v774_v58 }
 0x2a3   : > { %v799_v44 = vadd.f32 %v791_v12, %v775_v59  ;;  %v646_v46 = vpop.f32.mrb[12].mxu0  ;;  %v676_v47 = vpop.f32.mrb[8].mxu1  ;;  %v807_v30 = vadd.f32 %v783_v39, %v666_v10 }
 0x2a4   : > { %v800_v48 = vadd.f32 %v776_v18, %v646_v46  ;;  %v808_v50 = vmul.f32 %v646_v46, %v646_v46  ;;  %v826_v51 = vadd.f32 %v802_v62, %v676_v47  ;;  %v834_v52 = vmul.f32 %v676_v47, %v676_v47  ;;  %v648_v53 = vpop.f32.mrb[13].mxu0  ;;  %v678_v54 = vpop.f32.mrb[9].mxu1 }
 0x2a5   : > { %v801_v32 = vadd.f32 %v777_v22, %v648_v53  ;;  %v809_v55 = vmul.f32 %v648_v53, %v648_v53  ;;  %v827_v56 = vadd.f32 %v803_v4, %v678_v54  ;;  %v835_v57 = vmul.f32 %v678_v54, %v678_v54 }
 0x2a6   : > { %v816_v60 = vadd.f32 %v808_v50, %v792_v29  ;;  %v824_v61 = vadd.f32 %v800_v48, %v670_v27  ;;  %v842_v0 = vadd.f32 %v834_v52, %v818_v11  ;;  %v850_v1 = vmul.f32 %v826_v51, %v826_v51 }
 0x2a7   : > { %v817_v58 = vadd.f32 %v809_v55, %v793_v38  ;;  %v825_v59 = vadd.f32 %v801_v32, %v672_v36  ;;  %v843_v2 = vadd.f32 %v835_v57, %v819_v17  ;;  %v851_v3 = vmul.f32 %v827_v56, %v827_v56  ;;  %v682_v6 = vpop.f32.mrb[10].mxu1 }
 0x2a8   : > { %v840_v7 = vadd.f32 %v832_v42, %v816_v60  ;;  %v848_v8 = vmul.f32 %v824_v61, %v824_v61  ;;  %v858_v9 = vsub.f32 %v850_v1, %v842_v0  ;;  %v828_v62 = vadd.f32 %v804_v21, %v682_v6  ;;  %v684_v10 = vpop.f32.mrb[11].mxu1 }
 0x2a9   : > { %v841_v14 = vadd.f32 %v833_v45, %v817_v58  ;;  %v849_v15 = vmul.f32 %v825_v59, %v825_v59  ;;  %v859_v16 = vsub.f32 %v851_v3, %v843_v2  ;;  %v836_v18 = vmul.f32 %v682_v6, %v682_v6 }
 0x2aa   : > { %v856_v4 = vsub.f32 %v848_v8, %v840_v7  ;;  %v852_v19 = vmul.f32 %v828_v62, %v828_v62  ;;  %v829_v20 = vadd.f32 %v805_v28, %v684_v10  ;;  %v837_v22 = vmul.f32 %v684_v10, %v684_v10 }
 0x2ab   : > { %v857_v11 = vsub.f32 %v849_v15, %v841_v14  ;;  %v844_v23 = vadd.f32 %v836_v18, %v820_v37  ;;  %v688_v25 = vpop.f32.mrb[12].mxu1  ;;  %v822_v26 = vadd.f32 %v814_v40, %v798_v31  ;;  %v823_v17 = vadd.f32 %v815_v41, %v799_v44 }
 0x2ac   : > { %v864_v27 = vadd.f32 %v858_v9, %v856_v4  ;;  %v845_v29 = vadd.f32 %v837_v22, %v821_v24  ;;  %v853_v33 = vmul.f32 %v829_v20, %v829_v20  ;;  %v830_v34 = vadd.f32 %v806_v13, %v688_v25  ;;  %v690_v35 = vpop.f32.mrb[13].mxu1 }
 0x2ad   : > { %v873_v21 = vadd.f32 %v859_v16, %v857_v11  ;;  %v860_v36 = vsub.f32 %v852_v19, %v844_v23  ;;  %v838_v38 = vmul.f32 %v688_v25, %v688_v25  ;;  %v831_v39 = vadd.f32 %v807_v30, %v690_v35 }
 0x2ae   : > { %v861_v12 = vsub.f32 %v853_v33, %v845_v29  ;;  %v854_v42 = vmul.f32 %v830_v34, %v830_v34  ;;  %v839_v45 = vmul.f32 %v690_v35, %v690_v35  ;;  %v716_v37 = vadd.f32 %v715_v63, %v1543_v43 }
 0x2af   : > { %v865_v46 = vadd.f32 %v864_v27, %v860_v36  ;;  %v846_v28 = vadd.f32 %v838_v38, %v822_v26  ;;  %v855_v47 = vmul.f32 %v831_v39, %v831_v39  ;;  %v694_v48 = vpop.f32.mrb[14].mxu1  ;;  %v723_v13 = vadd.f32 %v722_v5, %v1545_v49 }
 0x2b0   : > { %v874_v40 = vadd.f32 %v873_v21, %v861_v12  ;;  %v847_v24 = vadd.f32 %v839_v45, %v823_v17  ;;  %v696_v41 = vpop.f32.mrb[15].mxu1  ;;  %v717_v50 = vrot.slane %v716_v37, 1  ;;  %v885_v0 = vstv %s884_s12 }
 0x2b1   : > { %v862_v31 = vsub.f32 %v854_v42, %v846_v28  ;;  %v724_v52 = vrot.slane %v723_v13, 1  ;;  %v1253_v1 = vmov 1966171168   ;;  %v896_v59 = vlaneseq }
 0x2b2   : > { %v863_v44 = vsub.f32 %v855_v47, %v847_v24  ;;  %v718_v55 = vadd.f32 %v717_v50, %v716_v37  ;;  %v894_v58 = vunpack.c.l.s4 %v1253_v1 }
 0x2b3   : > { %v866_v30 = vadd.f32 %v865_v46, %v862_v31  ;;  %v725_v43 = vadd.f32 %v724_v52, %v723_v13  ;;  %v897_v10 = vshrl.u32 %v896_v59, 7  ;;  %vm910_vm11 = vcmp.lt.s32.totalorder %v896_v59, 256 }
 0x2b4   : > { %v875_v51 = vadd.f32 %v874_v40, %v863_v44  ;;  %v726_v60 = vadd.f32 %v718_v55, %v694_v48  ;;  %v895_v62 = vunpack.c.0.s8 %v894_v58 }
 0x2b5   : > { %v867_v53 = vrot.slane %v866_v30, 4  ;;  %v727_v49 = vadd.f32 %v725_v43, %v696_v41 }
 0x2b6   : > { %v876_v54 = vrot.slane %v875_v51, 4  ;;  %v886_v7 = vadd.f32 %v885_v0, %v726_v60  ;;  %v898_v4 = vsub.s32 %v895_v62, %v897_v10 }
 0x2b7   : > { %v868_v32 = vadd.f32 %v867_v53, %v866_v30  ;;  %v887_v9 = vadd.f32 %v885_v0, %v727_v49 }
 0x2b8   : > { %v877_v56 = vadd.f32 %v876_v54, %v875_v51 }
 0x2b9   : > { %v869_v63 = vrot.slane %v868_v32, 2 }
 0x2ba   : > { %v878_v57 = vrot.slane %v877_v56, 2 }
 0x2bb   : > { %v870_v61 = vadd.f32 %v869_v63, %v868_v32 }
 0x2bc   : > { %v879_v5 = vadd.f32 %v878_v57, %v877_v56 }
 0x2bd   : > { %v871_v2 = vrot.slane %v870_v61, 1 }
 0x2be   : > { %v880_v3 = vrot.slane %v879_v5, 1 }
 0x2bf   : > { %v872_v6 = vadd.f32 %v871_v2, %v870_v61 }
 0x2c0   : > { %v881_v8 = vadd.f32 %v880_v3, %v879_v5 }
 0x2c1   : > { %v882_v14 = vmul.f32 0.5, %v872_v6 }
 0x2c2   : > { %v883_v15 = vmul.f32 0.5, %v881_v8 }
 0x2c3   : > { %v888_v16 = vadd.f32 %v886_v7, %v882_v14 }
 0x2c4   : > { %v889_v18 = vadd.f32 %v887_v9, %v883_v15 }
 0x2c6   : > { %v892_v19 = vcombine.low %v888_v16, %v889_v18 }
 0x2c8   : > { %v899_v20 = vrot.slane %v892_v19, %v898_v4 }
 0x2ca   : > { %v906_v22 = vrot.slane %v899_v20, %v898_v4 }
 0x2cc   : > { %912 = vst.msk [vmem:[%s359_s18] sm:$0x3] %vm910_vm11, %v906_v22 }
 0x2cd   : > { %1190 = shalt.err (!%p1187_p13)
}
 0x2ce   : > { %s1191_s22 = scalar_lea.hbm %s1563_s19, 32  ;;  %s1195_s12 = scalar_lea.hbm %s1614_s7, 64 }
 0x2cf   : > { %p1192_p1 = scmp.ne.s32.totalorder %s1563_s19, %s1191_s22  ;;  %p1196_p3 = scmp.lt.u32.totalorder %s1563_s19, %s1614_s7 }
 0x2d0   : > { %p1197_p4 = scmp.lt.u32.totalorder %s1195_s12, %s1191_s22  ;;  %p1199_p6 = scmp.lt.u32.totalorder %s1191_s22, %s1563_s19 }
 0x2d1   : > { %p1193_p2 = pnand %p1192_p1, %p1625_p9 }
 0x2d2   : > { %p1198_p5 = por %p1197_p4, %p1196_p3 }
 0x2d3   : > { %p1194_p0 = pneg %p1193_p2 }
 0x2d4   : > { %p1200_p10 = por %p1199_p6, %p1198_p5 }
 0x2d6   : > { %p1201_p11 = pnand %p1200_p10, %p1194_p0 }
 0x2d8   : > { %1204 = shalt.err (!%p1201_p11)
}
 0x2d9   : > { %1093 = dma.vmem_to_hbm [thread:$0]  (%p1625_p9), %s1565_s9, 32, %s1563_s19, %s914_s20  }
 0x2da PF: > { %s940_s18 = sand.u32 1, %s1231_s26   ;;  %p1626_p7 = scmp.ne.s32.totalorder %s1620_s15, 0 }
 0x2db   : > { %p1627_p8 = scmp.ge.s32.totalorder %s1243_s29, 2  ;;  %s941_s13 = scalar_lea.sflag [#allocation6], %s940_s18 }
 0x2dd   : > { %p1096_p12 = pnand %p1627_p8, %p1626_p7 }
 0x2df   : > { %1226 = dma.done.wait (!%p1096_p12), %s941_s13, 32  }
 0x2e0   : > { %1228 = vsyncadd (!%p1096_p12), %s941_s13, 4294967264  ;;  %p21_p13 = scmp.ge.s32.totalorder %s1323_s8, 4   ;;  %s1628_s26 = smov %s1235_s27 }
 0x2e1   : > { %s1629_s27 = smov %s1239_s28  ;;  %s1630_s28 = smov %s1335_s11 }
 0x2e2   : > { %s1631_s29 = smov %s1323_s8  ;;  %23 = sbr.rel (!%p21_p13) target bundleno = 7 (0x7), region = 127 }
 0x2e9   :  { %946 = vsyncpa [#allocation5], 1 }
 0x2ea   :  { %948 = vsyncpa [#allocation5 + $0x1], 1 }
 0x2eb   :  { %949 = vsyncpa [#allocation6], 1 }
 0x2ec   :  { %951 = vsyncpa [#allocation6 + $0x1], 1 }

</bundles_post_ra>
